<compile_context>
chip_gen: v6e
topology: v6e:2x2x1
jax: 0.10.0
libtpu: 0.0.40
codegen_flags: <defaults>
</compile_context>

<pallas_src>
import functools

import jax
import jax.numpy as jnp
from jax.experimental import pallas as pl
from jax.experimental.pallas import tpu as pltpu

IN_FEATURES = 100
HIDDEN = 250
OUT_FEATURES = 30

HID_PAD = 256          # 250 -> two 128-lane vregs / native 256-wide MXU
OUT_PAD = 128          # 30  -> lane-dense (unmasked) output stores
BATCH_TILE_ALIGN = 16  # bf16 sublane packing


def _round_up(n, m):
    return ((n + m - 1) // m) * m


def net100_kernel(x_ref,
                  w1_ref, b1_ref,
                  w2_ref, b2_ref,
                  w3_ref, b3_ref,
                  w4_ref, b4_ref,
                  o_ref):
    # x tile: (TM, 100) bf16 streamed from HBM.  All matmuls hit the bf16 MXU
    # path and accumulate in f32; bias-add / ReLU stay in f32 on the VPU
    # (friendly to v5e, which has no bf16 VALU).  Activations are cast to
    # bf16 only at the MXU inputs.

    # fc1 + ReLU
    h = jnp.dot(x_ref[...], w1_ref[...], preferred_element_type=jnp.float32)
    h = jnp.maximum(h + b1_ref[...], 0.0)

    # fc2 + ReLU
    h = jnp.dot(h.astype(jnp.bfloat16), w2_ref[...],
                preferred_element_type=jnp.float32)
    h = jnp.maximum(h + b2_ref[...], 0.0)

    # fc3 + ReLU
    h = jnp.dot(h.astype(jnp.bfloat16), w3_ref[...],
                preferred_element_type=jnp.float32)
    h = jnp.maximum(h + b3_ref[...], 0.0)

    # fc4 (no activation); store as bf16 into the 128-lane-dense out block.
    h = jnp.dot(h.astype(jnp.bfloat16), w4_ref[...],
                preferred_element_type=jnp.float32)
    o_ref[...] = (h + b4_ref[...]).astype(o_ref.dtype)


def prepare_params(params, compute_dtype=jnp.bfloat16):
    """Pad weights/biases to MXU/lane-aligned shapes, cast weights to bf16.

    Done once, offline.  Padding is zeros, so padded lanes contribute nothing
    to the next layer (exact math).  w1 keeps its natural K=100 so x needs no
    feature padding.
    """
    def pad_w(w, rows, cols):
        out = jnp.zeros((rows, cols), compute_dtype)
        return out.at[:w.shape[0], :w.shape[1]].set(w.astype(compute_dtype))

    def pad_b(b, cols):
        out = jnp.zeros((1, cols), jnp.float32)
        return out.at[0, :b.shape[0]].set(b.astype(jnp.float32))

    return {
        "w1": pad_w(params["w1"], IN_FEATURES, HID_PAD),   # K stays 100
        "b1": pad_b(params["b1"], HID_PAD),
        "w2": pad_w(params["w2"], HID_PAD, HID_PAD),
        "b2": pad_b(params["b2"], HID_PAD),
        "w3": pad_w(params["w3"], HID_PAD, HID_PAD),
        "b3": pad_b(params["b3"], HID_PAD),
        "w4": pad_w(params["w4"], HID_PAD, OUT_PAD),
        "b4": pad_b(params["b4"], OUT_PAD),
    }


@functools.partial(jax.jit, static_argnames=("tm",))
def net100_forward(x, padded_params, *, tm=2048):
    """x: (B, 100) float32 (or bf16); padded_params: prepare_params() output."""
    B, in_dim = x.shape
    assert in_dim == IN_FEATURES, in_dim

    # Batch tile: multiple of 16 (bf16 sublane tile), capped at ceil(B/2) so
    # grid_n >= 2 whenever B > 16 and both v7x TensorCores get tiles.
    half = _round_up(max(-(-B // 2), 1), BATCH_TILE_ALIGN)
    tm_eff = max(BATCH_TILE_ALIGN, min(_round_up(tm, BATCH_TILE_ALIGN), half))
    grid_n = pl.cdiv(B, tm_eff)
    b_pad = grid_n * tm_eff

    # Stream x in bf16: single fused cast(+zero batch-pad) pass; feature dim
    # stays at its natural 100 (no feature-pad pass).  In a larger pipeline
    # XLA fuses this cast into x's producer, making it free.
    x_bf16 = x.astype(jnp.bfloat16)
    if b_pad != B:
        x_bf16 = jnp.pad(x_bf16, ((0, b_pad - B), (0, 0)))  # zeros: safe rows

    p = padded_params
    # Weights/biases: constant index_map -> VMEM-resident across grid steps;
    # only x / out stream from HBM.
    resident = lambda a: pl.BlockSpec(a.shape, lambda i: (0, 0))

    out = pl.pallas_call(
        net100_kernel,
        out_shape=jax.ShapeDtypeStruct((b_pad, OUT_PAD), jnp.bfloat16),
        grid=(grid_n,),
        in_specs=[
            # last dim == full array dim (100) is legal; rows are 16-aligned.
            pl.BlockSpec((tm_eff, IN_FEATURES), lambda i: (i, 0)),
            resident(p["w1"]), resident(p["b1"]),
            resident(p["w2"]), resident(p["b2"]),
            resident(p["w3"]), resident(p["b3"]),
            resident(p["w4"]), resident(p["b4"]),
        ],
        out_specs=pl.BlockSpec((tm_eff, OUT_PAD), lambda i: (i, 0)),
        compiler_params=pltpu.CompilerParams(
            dimension_semantics=("parallel",),
            vmem_limit_bytes=32 * 1024 * 1024),
    )(x_bf16, p["w1"], p["b1"], p["w2"], p["b2"],
      p["w3"], p["b3"], p["w4"], p["b4"])

    # Tiny fused slice+cast (b_pad,128)bf16 -> (B,30)f32; heavy streams stay bf16.
    return out[:B, :OUT_FEATURES].astype(jnp.float32)


def init_params(key):
    """Deterministic init mirroring nn.Linear shapes (stored transposed)."""
    dims = [(IN_FEATURES, HIDDEN), (HIDDEN, HIDDEN), (HIDDEN, HIDDEN),
            (HIDDEN, OUT_FEATURES)]
    params = {}
    for i, (fan_in, fan_out) in enumerate(dims, start=1):
        key, kw, kb = jax.random.split(key, 3)
        bound = 1.0 / jnp.sqrt(fan_in)
        # PyTorch Linear weight is (out, in); store transposed (in, out).
        params[f"w{i}"] = jax.random.uniform(
            kw, (fan_in, fan_out), jnp.float32, -bound, bound)
        params[f"b{i}"] = jax.random.uniform(
            kb, (fan_out,), jnp.float32, -bound, bound)
    return params


def reference_forward(x, params):
    """Pure-JAX reference matching the kernel numerics (bf16 MXU, f32 acc)."""
    def lin(h, w, b):
        return jnp.dot(h.astype(jnp.bfloat16), w.astype(jnp.bfloat16),
                       preferred_element_type=jnp.float32) + b
    h = jnp.maximum(lin(x, params["w1"], params["b1"]), 0.0)
    h = jnp.maximum(lin(h, params["w2"], params["b2"]), 0.0)
    h = jnp.maximum(lin(h, params["w3"], params["b3"]), 0.0)
    return lin(h, params["w4"], params["b4"])


if __name__ == "__main__":
    key = jax.random.PRNGKey(0)
    kp, kx = jax.random.split(key)

    params = init_params(kp)
    padded = prepare_params(params)

    B = 8
    x = jax.random.normal(kx, (B, IN_FEATURES), jnp.float32)

    out = net100_forward(x, padded)
    out = jax.block_until_ready(out)

    ref = reference_forward(x, params)
    assert out.shape == (B, OUT_FEATURES), out.shape
    max_err = float(jnp.max(jnp.abs(out - ref)))
    # bf16 weights + bf16 output store: compare at bf16-level tolerance.
    assert jnp.allclose(out, ref, atol=2e-2, rtol=2e-2), max_err

    print("KERNEL_OK")
</pallas_src>

<mosaic_0001>
module attributes {stable_mosaic.version = 11 : i64} {
  func.func @net100_kernel(%arg0: i32, %arg1: memref<16x100xbf16, #tpu.memory_space<vmem>>, %arg2: memref<100x256xbf16, #tpu.memory_space<vmem>>, %arg3: memref<1x256xf32, #tpu.memory_space<vmem>>, %arg4: memref<256x256xbf16, #tpu.memory_space<vmem>>, %arg5: memref<1x256xf32, #tpu.memory_space<vmem>>, %arg6: memref<256x256xbf16, #tpu.memory_space<vmem>>, %arg7: memref<1x256xf32, #tpu.memory_space<vmem>>, %arg8: memref<256x128xbf16, #tpu.memory_space<vmem>>, %arg9: memref<1x128xf32, #tpu.memory_space<vmem>>, %arg10: memref<16x128xbf16, #tpu.memory_space<vmem>>) attributes {dimension_semantics = [#tpu.dimension_semantics<parallel>], iteration_bounds = array<i64: 1>, scalar_prefetch = 0 : i64, scratch_operands = 0 : i64, tpu.core_type = #tpu.core_type<tc>, window_params = [{transform_indices = @transform_0, window_bounds = array<i64: 16, 100>}, {pipeline_mode = #tpu.pipeline_mode<synchronous>, transform_indices = @transform_1, window_bounds = array<i64: 100, 256>}, {pipeline_mode = #tpu.pipeline_mode<synchronous>, transform_indices = @transform_2, window_bounds = array<i64: 1, 256>}, {pipeline_mode = #tpu.pipeline_mode<synchronous>, transform_indices = @transform_3, window_bounds = array<i64: 256, 256>}, {pipeline_mode = #tpu.pipeline_mode<synchronous>, transform_indices = @transform_4, window_bounds = array<i64: 1, 256>}, {pipeline_mode = #tpu.pipeline_mode<synchronous>, transform_indices = @transform_5, window_bounds = array<i64: 256, 256>}, {pipeline_mode = #tpu.pipeline_mode<synchronous>, transform_indices = @transform_6, window_bounds = array<i64: 1, 256>}, {pipeline_mode = #tpu.pipeline_mode<synchronous>, transform_indices = @transform_7, window_bounds = array<i64: 256, 128>}, {pipeline_mode = #tpu.pipeline_mode<synchronous>, transform_indices = @transform_8, window_bounds = array<i64: 1, 128>}, {transform_indices = @transform_9, window_bounds = array<i64: 16, 128>}]} {
    %c0 = arith.constant 0 : index
    %c0_0 = arith.constant 0 : index
    %0 = vector.load %arg1[%c0, %c0_0] : memref<16x100xbf16, #tpu.memory_space<vmem>>, vector<16x100xbf16>
    %c0_1 = arith.constant 0 : index
    %c0_2 = arith.constant 0 : index
    %1 = vector.load %arg2[%c0_1, %c0_2] : memref<100x256xbf16, #tpu.memory_space<vmem>>, vector<100x256xbf16>
    %cst = arith.constant dense<0.000000e+00> : vector<16x256xf32>
    %2 = tpu.matmul %0, %1, %cst {dimension_numbers = #tpu.dot_dimension_numbers<[1], [0], [0], [1], [0, 0, 1, 1], [], []>} : vector<16x100xbf16>, vector<100x256xbf16>, vector<16x256xf32> -> vector<16x256xf32>
    %c0_3 = arith.constant 0 : index
    %c0_4 = arith.constant 0 : index
    %3 = vector.load %arg3[%c0_3, %c0_4] : memref<1x256xf32, #tpu.memory_space<vmem>>, vector<1x256xf32>
    %4 = vector.broadcast %3 : vector<1x256xf32> to vector<16x256xf32>
    %5 = arith.addf %2, %4 : vector<16x256xf32>
    %cst_5 = arith.constant 0.000000e+00 : f32
    %6 = vector.broadcast %cst_5 : f32 to vector<16x256xf32>
    %7 = arith.maximumf %5, %6 : vector<16x256xf32>
    %8 = arith.truncf %7 : vector<16x256xf32> to vector<16x256xbf16>
    %c0_6 = arith.constant 0 : index
    %c0_7 = arith.constant 0 : index
    %9 = vector.load %arg4[%c0_6, %c0_7] : memref<256x256xbf16, #tpu.memory_space<vmem>>, vector<256x256xbf16>
    %cst_8 = arith.constant dense<0.000000e+00> : vector<16x256xf32>
    %10 = tpu.matmul %8, %9, %cst_8 {dimension_numbers = #tpu.dot_dimension_numbers<[1], [0], [0], [1], [0, 0, 1, 1], [], []>} : vector<16x256xbf16>, vector<256x256xbf16>, vector<16x256xf32> -> vector<16x256xf32>
    %c0_9 = arith.constant 0 : index
    %c0_10 = arith.constant 0 : index
    %11 = vector.load %arg5[%c0_9, %c0_10] : memref<1x256xf32, #tpu.memory_space<vmem>>, vector<1x256xf32>
    %12 = vector.broadcast %11 : vector<1x256xf32> to vector<16x256xf32>
    %13 = arith.addf %10, %12 : vector<16x256xf32>
    %cst_11 = arith.constant 0.000000e+00 : f32
    %14 = vector.broadcast %cst_11 : f32 to vector<16x256xf32>
    %15 = arith.maximumf %13, %14 : vector<16x256xf32>
    %16 = arith.truncf %15 : vector<16x256xf32> to vector<16x256xbf16>
    %c0_12 = arith.constant 0 : index
    %c0_13 = arith.constant 0 : index
    %17 = vector.load %arg6[%c0_12, %c0_13] : memref<256x256xbf16, #tpu.memory_space<vmem>>, vector<256x256xbf16>
    %cst_14 = arith.constant dense<0.000000e+00> : vector<16x256xf32>
    %18 = tpu.matmul %16, %17, %cst_14 {dimension_numbers = #tpu.dot_dimension_numbers<[1], [0], [0], [1], [0, 0, 1, 1], [], []>} : vector<16x256xbf16>, vector<256x256xbf16>, vector<16x256xf32> -> vector<16x256xf32>
    %c0_15 = arith.constant 0 : index
    %c0_16 = arith.constant 0 : index
    %19 = vector.load %arg7[%c0_15, %c0_16] : memref<1x256xf32, #tpu.memory_space<vmem>>, vector<1x256xf32>
    %20 = vector.broadcast %19 : vector<1x256xf32> to vector<16x256xf32>
    %21 = arith.addf %18, %20 : vector<16x256xf32>
    %cst_17 = arith.constant 0.000000e+00 : f32
    %22 = vector.broadcast %cst_17 : f32 to vector<16x256xf32>
    %23 = arith.maximumf %21, %22 : vector<16x256xf32>
    %24 = arith.truncf %23 : vector<16x256xf32> to vector<16x256xbf16>
    %c0_18 = arith.constant 0 : index
    %c0_19 = arith.constant 0 : index
    %25 = vector.load %arg8[%c0_18, %c0_19] : memref<256x128xbf16, #tpu.memory_space<vmem>>, vector<256x128xbf16>
    %cst_20 = arith.constant dense<0.000000e+00> : vector<16x128xf32>
    %26 = tpu.matmul %24, %25, %cst_20 {dimension_numbers = #tpu.dot_dimension_numbers<[1], [0], [0], [1], [0, 0, 1, 1], [], []>} : vector<16x256xbf16>, vector<256x128xbf16>, vector<16x128xf32> -> vector<16x128xf32>
    %c0_21 = arith.constant 0 : index
    %c0_22 = arith.constant 0 : index
    %27 = vector.load %arg9[%c0_21, %c0_22] : memref<1x128xf32, #tpu.memory_space<vmem>>, vector<1x128xf32>
    %28 = vector.broadcast %27 : vector<1x128xf32> to vector<16x128xf32>
    %29 = arith.addf %26, %28 : vector<16x128xf32>
    %30 = arith.truncf %29 : vector<16x128xf32> to vector<16x128xbf16>
    %c0_23 = arith.constant 0 : index
    %c0_24 = arith.constant 0 : index
    %31 = vector.load %arg10[%c0_23, %c0_24] : memref<16x128xbf16, #tpu.memory_space<vmem>>, vector<16x128xbf16>
    tpu.vector_store %arg10[%c0_23, %c0_24], %30 {strides = array<i32>} : memref<16x128xbf16, #tpu.memory_space<vmem>>, vector<16x128xbf16>,
    return
  }
  func.func @transform_0(%arg0: i32) -> (i32, i32) {
    %c0_i32 = arith.constant 0 : i32
    %c0_i32_0 = arith.constant 0 : i32
    return %arg0, %c0_i32 : i32, i32
  }
  func.func @transform_1(%arg0: i32) -> (i32, i32) {
    %c0_i32 = arith.constant 0 : i32
    %c0_i32_0 = arith.constant 0 : i32
    %c0_i32_1 = arith.constant 0 : i32
    return %c0_i32, %c0_i32_0 : i32, i32
  }
  func.func @transform_2(%arg0: i32) -> (i32, i32) {
    %c0_i32 = arith.constant 0 : i32
    %c0_i32_0 = arith.constant 0 : i32
    %c0_i32_1 = arith.constant 0 : i32
    return %c0_i32, %c0_i32_0 : i32, i32
  }
  func.func @transform_3(%arg0: i32) -> (i32, i32) {
    %c0_i32 = arith.constant 0 : i32
    %c0_i32_0 = arith.constant 0 : i32
    %c0_i32_1 = arith.constant 0 : i32
    return %c0_i32, %c0_i32_0 : i32, i32
  }
  func.func @transform_4(%arg0: i32) -> (i32, i32) {
    %c0_i32 = arith.constant 0 : i32
    %c0_i32_0 = arith.constant 0 : i32
    %c0_i32_1 = arith.constant 0 : i32
    return %c0_i32, %c0_i32_0 : i32, i32
  }
  func.func @transform_5(%arg0: i32) -> (i32, i32) {
    %c0_i32 = arith.constant 0 : i32
    %c0_i32_0 = arith.constant 0 : i32
    %c0_i32_1 = arith.constant 0 : i32
    return %c0_i32, %c0_i32_0 : i32, i32
  }
  func.func @transform_6(%arg0: i32) -> (i32, i32) {
    %c0_i32 = arith.constant 0 : i32
    %c0_i32_0 = arith.constant 0 : i32
    %c0_i32_1 = arith.constant 0 : i32
    return %c0_i32, %c0_i32_0 : i32, i32
  }
  func.func @transform_7(%arg0: i32) -> (i32, i32) {
    %c0_i32 = arith.constant 0 : i32
    %c0_i32_0 = arith.constant 0 : i32
    %c0_i32_1 = arith.constant 0 : i32
    return %c0_i32, %c0_i32_0 : i32, i32
  }
  func.func @transform_8(%arg0: i32) -> (i32, i32) {
    %c0_i32 = arith.constant 0 : i32
    %c0_i32_0 = arith.constant 0 : i32
    %c0_i32_1 = arith.constant 0 : i32
    return %c0_i32, %c0_i32_0 : i32, i32
  }
  func.func @transform_9(%arg0: i32) -> (i32, i32) {
    %c0_i32 = arith.constant 0 : i32
    %c0_i32_0 = arith.constant 0 : i32
    return %arg0, %c0_i32 : i32, i32
  }
}

</mosaic_0001>

<bundles_post_ra>
// kernel: net100_forward.1
= control target key start
LH: loop header
LB: loop body
LE: loop exit
PB: predicated region body
PF: predicated region fallthrough
CT: control target
= control target key end

     0   :  { %14 = vsyncpa [#allocation3], 0  ;;  %s1400_s0 = inlined_call_operand.vmem [shape: bf16[16,100], index: 0, kind: input, shape index: {}]   ;;  %s1401_s1 = inlined_call_operand.hbm [shape: bf16[100,256], index: 1, kind: input, shape index: {}]   ;;  %s1402_s2 = inlined_call_operand.vmem [shape: f32[1,256], index: 2, kind: input, shape index: {}]   ;;  %s1403_s3 = inlined_call_operand.hbm [shape: bf16[256,256], index: 3, kind: input, shape index: {}]   ;;  %s1404_s4 = inlined_call_operand.vmem [shape: f32[1,256], index: 4, kind: input, shape index: {}]   ;;  %s1405_s5 = inlined_call_operand.hbm [shape: bf16[256,256], index: 5, kind: input, shape index: {}]   ;;  %s1406_s6 = inlined_call_operand.vmem [shape: f32[1,256], index: 6, kind: input, shape index: {}]   ;;  %s1407_s7 = inlined_call_operand.hbm [shape: bf16[256,128], index: 7, kind: input, shape index: {}]   ;;  %s1408_s8 = inlined_call_operand.vmem [shape: f32[1,128], index: 8, kind: input, shape index: {}]   ;;  %s1409_s9 = inlined_call_operand.vmem [shape: bf16[16,128], index: 9, kind: output, shape index: {}]  }
   0x1   :  { %15 = vsyncpa [#allocation5], 0 }
   0x2   :  { %16 = vsyncpa [#allocation8], 0  ;;  %s1301_s30 = smov [#allocation4]   ;;  %s1302_s11 = smov [#allocation2]  }
   0x3   :  { %s38_s10 = sshll.u32 %s1301_s30, 4  ;;  %s24_s12 = sshll.u32 %s1302_s11, 4  ;;  %s39_s10 = int_to_ptr.vmem [resolvable:$true] %s38_s10  ;;  %s25_s12 = int_to_ptr.vmem [resolvable:$true] %s24_s12 }
   0x4   :  { %s1223_s13 = scalar_lea.vmem %s39_s10, 4096  ;;  %p1228_p1 = scmp.lt.s32.totalorder %s39_s10, %s39_s10 }
   0x5   :  { %p1224_p0 = scmp.ne.s32.totalorder %s39_s10, %s1223_s13  ;;  %p1229_p2 = scmp.lt.s32.totalorder %s1223_s13, %s1223_s13 }
   0x7   :  { %p1230_p3 = por %p1229_p2, %p1228_p1 }
   0x9   :  { %p1231_p4 = pnand %p1230_p3, %p1224_p0 }
   0xb   :  { %1234 = shalt.err (!%p1231_p4)
}
   0xc   :  { %s1303_s14 = smov 128   ;;  %s1304_s15 = smov 8  }
   0xd   :  { %44 = dma.hbm_to_vmem [thread:$0]  %s1403_s3, 4096, %s39_s10, [#allocation5], %s1303_s14, %s1303_s14, %s1304_s15  }
   0xe   :  { %s1243_s18 = scalar_lea.vmem %s25_s12, 1664  ;;  %p1248_p6 = scmp.lt.s32.totalorder %s25_s12, %s25_s12 }
   0xf   :  { %p1244_p5 = scmp.ne.s32.totalorder %s25_s12, %s1243_s18  ;;  %p1249_p7 = scmp.lt.s32.totalorder %s1243_s18, %s1243_s18 }
  0x11   :  { %p1250_p8 = por %p1249_p7, %p1248_p6 }
  0x13   :  { %p1251_p9 = pnand %p1250_p8, %p1244_p5 }
  0x15   :  { %1254 = shalt.err (!%p1251_p9)
}
  0x16   :  { %30 = dma.hbm_to_vmem [thread:$0]  %s1401_s1, 1664, %s25_s12, [#allocation3], %s1303_s14, %s1303_s14, %s1304_s15  }
  0x17   :  { %s1305_s21 = smov [#allocation6]   ;;  %s1306_s23 = smov [#allocation7]  }
  0x18   :  { %s52_s22 = sshll.u32 %s1305_s21, 4  ;;  %s66_s24 = sshll.u32 %s1306_s23, 4  ;;  %s53_s22 = int_to_ptr.vmem [resolvable:$true] %s52_s22  ;;  %s67_s24 = int_to_ptr.vmem [resolvable:$true] %s66_s24 }
  0x19   :  { %s1263_s25 = scalar_lea.vmem %s53_s22, 4096  ;;  %p1268_p11 = scmp.lt.s32.totalorder %s53_s22, %s53_s22 }
  0x1a   :  { %p1264_p10 = scmp.ne.s32.totalorder %s53_s22, %s1263_s25  ;;  %p1269_p12 = scmp.lt.s32.totalorder %s1263_s25, %s1263_s25 }
  0x1c   :  { %p1270_p13 = por %p1269_p12, %p1268_p11 }
  0x1e   :  { %p1271_p0 = pnand %p1270_p13, %p1264_p10 }
  0x20   :  { %1274 = shalt.err (!%p1271_p0)
}
  0x21   :  { %58 = dma.hbm_to_vmem [thread:$0]  %s1405_s5, 4096, %s53_s22, [#allocation5], %s1303_s14, %s1303_s14, %s1304_s15  }
  0x22   :  { %s1283_s27 = scalar_lea.vmem %s67_s24, 2048  ;;  %p1288_p2 = scmp.lt.s32.totalorder %s67_s24, %s67_s24 }
  0x23   :  { %p1284_p1 = scmp.ne.s32.totalorder %s67_s24, %s1283_s27  ;;  %p1289_p3 = scmp.lt.s32.totalorder %s1283_s27, %s1283_s27 }
  0x25   :  { %p1290_p4 = por %p1289_p3, %p1288_p2 }
  0x27   :  { %p1291_p5 = pnand %p1290_p4, %p1284_p1 }
  0x29   :  { %1294 = shalt.err (!%p1291_p5)
}
  0x2a   :  { %s1307_s1 = smov 64   ;;  %s1308_s28 = smov 4  }
  0x2b   :  { %72 = dma.hbm_to_vmem [thread:$0]  %s1407_s7, 2048, %s67_s24, [#allocation8], %s1307_s1, %s1307_s1, %s1308_s28  }
  0x2c   :  { %1295 = dma.done.wait [#allocation3], 1664  }
  0x2d   :  { %1296 = vsyncadd [#allocation3], 4294965632 }
  0x2e   :  { %1297 = dma.done.wait [#allocation5], 8192  }
  0x2f   :  { %1298 = vsyncadd [#allocation5], 4294959104 }
  0x30   :  { %1299 = dma.done.wait [#allocation8], 2048  }
  0x31   :  { %1300 = vsyncadd [#allocation8], 4294965248  ;;  %v1309_v0 = vmov 0   ;;  %v102_v1 = vld [vmem:[#allocation2 + $0x60] sm:$0x33]  ;;  %vm189_vm0 = vcmask 1041408  }
  0x32   :  { %228 = vmatprep.mubr.bf16.mxu0 %v1309_v0  ;;  %v958_v2 = vcombine.high %v102_v1, %v102_v1  ;;  %v957_v3 = vcombine.low %v102_v1, %v102_v1  ;;  %v1084_v4 = vld [vmem:[#allocation2 + $0x54] ss:$8 sps:$4 sm:$0xff]   ;;  %v1086_v6 = vld [vmem:[#allocation2 + $0x50] ss:$8 sps:$4 sm:$0xff]   ;;  %v1087_v7 = vld [vmem:[#allocation2 + $0x44] ss:$8 sps:$4 sm:$0xff]  }
  0x33   :  { %v1089_v8 = vld [vmem:[#allocation2 + $0x40] ss:$8 sps:$4 sm:$0xff]   ;;  %v1090_v9 = vld [vmem:[#allocation2 + $0x34] ss:$8 sps:$4 sm:$0xff]   ;;  %v1092_v12 = vld [vmem:[#allocation2 + $0x30] ss:$8 sps:$4 sm:$0xff]  }
  0x34   :  { %959 = vmatprep.subr.msk.bf16.mxu0 %vm189_vm0, %v958_v2  ;;  %v191_v5 = vsel %vm189_vm0, %v957_v3, 0  ;;  %v1103_v10 = vld [vmem:[#allocation4 + $0x74] ss:$8 sps:$4 sm:$0xff]   ;;  %v1105_v11 = vld [vmem:[#allocation4 + $0x70] ss:$8 sps:$4 sm:$0xff]   ;;  %vm185_vm1 = vcmask 818176  }
  0x35   :  { %199 = vmatpush1.bf16.msra.mxu0 %v191_v5  ;;  %v1106_v13 = vld [vmem:[#allocation4 + $0x64] ss:$8 sps:$4 sm:$0xff]   ;;  %449 = vmatprep.subr.bf16.mxu1 %v1103_v10  ;;  %v1108_v15 = vld [vmem:[#allocation4 + $0x60] ss:$8 sps:$4 sm:$0xff]   ;;  %v1109_v16 = vld [vmem:[#allocation4 + $0x54] ss:$8 sps:$4 sm:$0xff]  }
  0x36   :  { %200 = vmatprep.subr.bf16.mxu0 %v1084_v4  ;;  %v1093_v14 = vld [vmem:[#allocation2 + $0x24] ss:$8 sps:$4 sm:$0xff]   ;;  %450 = vmatpush1.bf16.msra.mxu1 %v1105_v11  ;;  %v1095_v17 = vld [vmem:[#allocation2 + $0x20] ss:$8 sps:$4 sm:$0xff]   ;;  %v1096_v18 = vld [vmem:[#allocation2 + $0x14] ss:$8 sps:$4 sm:$0xff]  }
  0x37   :  { %451 = vmatprep.subr.bf16.mxu1 %v1106_v13  ;;  %v1111_v19 = vld [vmem:[#allocation4 + $0x50] ss:$8 sps:$4 sm:$0xff]   ;;  %v1112_v20 = vld [vmem:[#allocation4 + $0x44] ss:$8 sps:$4 sm:$0xff]   ;;  %v1114_v23 = vld [vmem:[#allocation4 + $0x40] ss:$8 sps:$4 sm:$0xff]  }
  0x38   :  { %v1098_v21 = vld [vmem:[#allocation2 + $0x10] ss:$8 sps:$4 sm:$0xff]   ;;  %v1099_v22 = vld [vmem:[#allocation2 + $0x4] ss:$8 sps:$4 sm:$0xff]   ;;  %v1101_v25 = vld [vmem:[#allocation2] ss:$8 sps:$4 sm:$0xff]  }
  0x39   :  { %201 = vmatpush1.bf16.msra.mxu0 %v1086_v6  ;;  %v1115_v24 = vld [vmem:[#allocation4 + $0x34] ss:$8 sps:$4 sm:$0xff]   ;;  %v1117_v26 = vld [vmem:[#allocation4 + $0x30] ss:$8 sps:$4 sm:$0xff]   ;;  %v1118_v28 = vld [vmem:[#allocation4 + $0x24] ss:$8 sps:$4 sm:$0xff]  }
  0x3a   :  { %202 = vmatprep.subr.bf16.mxu0 %v1087_v7  ;;  %452 = vmatpush1.bf16.msra.mxu1 %v1108_v15  ;;  %v1102_v27 = vld [vmem:[%s1400_s0] sm:$0xff]   ;;  %v1120_v29 = vld [vmem:[#allocation4 + $0x20] ss:$8 sps:$4 sm:$0xff]   ;;  %v1124_v32 = vld [vmem:[#allocation4 + $0x4] ss:$8 sps:$4 sm:$0xff]  }
  0x3b   :  { %453 = vmatprep.subr.bf16.mxu1 %v1109_v16  ;;  %v1121_v30 = vld [vmem:[#allocation4 + $0x14] ss:$8 sps:$4 sm:$0xff]   ;;  %v1123_v31 = vld [vmem:[#allocation4 + $0x10] ss:$8 sps:$4 sm:$0xff]   ;;  %v1126_v33 = vld [vmem:[#allocation4] ss:$8 sps:$4 sm:$0xff]  }
  0x3c   :  { %v1127_v34 = vld [vmem:[#allocation4 + $0xf4] ss:$8 sps:$4 sm:$0xff]   ;;  %v1129_v35 = vld [vmem:[#allocation4 + $0xf0] ss:$8 sps:$4 sm:$0xff]   ;;  %v1130_v36 = vld [vmem:[#allocation4 + $0xe4] ss:$8 sps:$4 sm:$0xff]  }
  0x3d   :  { %203 = vmatpush1.bf16.msra.mxu0 %v1089_v8  ;;  %v1132_v37 = vld [vmem:[#allocation4 + $0xe0] ss:$8 sps:$4 sm:$0xff]   ;;  %v1133_v38 = vld [vmem:[#allocation4 + $0xd4] ss:$8 sps:$4 sm:$0xff]   ;;  %v1135_v39 = vld [vmem:[#allocation4 + $0xd0] ss:$8 sps:$4 sm:$0xff]  }
  0x3e   :  { %204 = vmatprep.subr.bf16.mxu0 %v1090_v9  ;;  %454 = vmatpush1.bf16.msra.mxu1 %v1111_v19  ;;  %v1136_v40 = vld [vmem:[#allocation4 + $0xc4] ss:$8 sps:$4 sm:$0xff]   ;;  %v1138_v41 = vld [vmem:[#allocation4 + $0xc0] ss:$8 sps:$4 sm:$0xff]   ;;  %v1139_v42 = vld [vmem:[#allocation4 + $0xb4] ss:$8 sps:$4 sm:$0xff]  }
  0x3f   :  { %455 = vmatprep.subr.bf16.mxu1 %v1112_v20  ;;  %v1141_v43 = vld [vmem:[#allocation4 + $0xb0] ss:$8 sps:$4 sm:$0xff]   ;;  %v1142_v44 = vld [vmem:[#allocation4 + $0xa4] ss:$8 sps:$4 sm:$0xff]   ;;  %v1144_v45 = vld [vmem:[#allocation4 + $0xa0] ss:$8 sps:$4 sm:$0xff]  }
  0x40   :  { %v1145_v46 = vld [vmem:[#allocation4 + $0x94] ss:$8 sps:$4 sm:$0xff]   ;;  %v1147_v47 = vld [vmem:[#allocation4 + $0x90] ss:$8 sps:$4 sm:$0xff]   ;;  %v1148_v48 = vld [vmem:[#allocation4 + $0x84] ss:$8 sps:$4 sm:$0xff]  }
  0x41   :  { %205 = vmatpush1.bf16.msra.mxu0 %v1092_v12  ;;  %v1150_v49 = vld [vmem:[#allocation4 + $0x80] ss:$8 sps:$4 sm:$0xff]   ;;  %v1151_v50 = vld [vmem:[#allocation6 + $0x70] ss:$8 sps:$4 sm:$0xff]   ;;  %v1153_v51 = vld [vmem:[#allocation6 + $0x74] ss:$8 sps:$4 sm:$0xff]   ;;  %v105_v12 = vlaneseq }
  0x42   :  { %206 = vmatprep.subr.bf16.mxu0 %v1093_v14  ;;  %456 = vmatpush1.bf16.msra.mxu1 %v1114_v23  ;;  %v1156_v52 = vld [vmem:[#allocation6 + $0x64] ss:$8 sps:$4 sm:$0xff]   ;;  %v1154_v53 = vld [vmem:[#allocation6 + $0x60] ss:$8 sps:$4 sm:$0xff]   ;;  %v1159_v54 = vld [vmem:[#allocation6 + $0x54] ss:$8 sps:$4 sm:$0xff]  }
  0x43   :  { %457 = vmatprep.subr.bf16.mxu1 %v1115_v24  ;;  %v1157_v55 = vld [vmem:[#allocation6 + $0x50] ss:$8 sps:$4 sm:$0xff]   ;;  %v1162_v56 = vld [vmem:[#allocation6 + $0x44] ss:$8 sps:$4 sm:$0xff]   ;;  %v1160_v57 = vld [vmem:[#allocation6 + $0x40] ss:$8 sps:$4 sm:$0xff]  }
  0x44   :  { %v1165_v58 = vld [vmem:[#allocation6 + $0x34] ss:$8 sps:$4 sm:$0xff]   ;;  %v1163_v59 = vld [vmem:[#allocation6 + $0x30] ss:$8 sps:$4 sm:$0xff]   ;;  %v1168_v60 = vld [vmem:[#allocation6 + $0x24] ss:$8 sps:$4 sm:$0xff]  }
  0x45   :  { %207 = vmatpush1.bf16.msra.mxu0 %v1095_v17  ;;  %v1166_v61 = vld [vmem:[#allocation6 + $0x20] ss:$8 sps:$4 sm:$0xff]   ;;  %v1171_v62 = vld [vmem:[#allocation6 + $0x14] ss:$8 sps:$4 sm:$0xff]   ;;  %v1169_v63 = vld [vmem:[#allocation6 + $0x10] ss:$8 sps:$4 sm:$0xff]  }
  0x46   :  { %208 = vmatprep.subr.bf16.mxu0 %v1096_v18  ;;  %458 = vmatpush1.bf16.msra.mxu1 %v1117_v26  ;;  %v1174_v0 = vld [vmem:[#allocation6 + $0x4] ss:$8 sps:$4 sm:$0xff]   ;;  %v1172_v1 = vld [vmem:[#allocation6] ss:$8 sps:$4 sm:$0xff]   ;;  %v1177_v2 = vld [vmem:[#allocation6 + $0xf4] ss:$8 sps:$4 sm:$0xff]  }
  0x47   :  { %459 = vmatprep.subr.bf16.mxu1 %v1118_v28  ;;  %v1175_v3 = vld [vmem:[#allocation6 + $0xf0] ss:$8 sps:$4 sm:$0xff]   ;;  %v1180_v4 = vld [vmem:[#allocation6 + $0xe4] ss:$8 sps:$4 sm:$0xff]   ;;  %v1178_v5 = vld [vmem:[#allocation6 + $0xe0] ss:$8 sps:$4 sm:$0xff]  }
  0x48   :  { %v1183_v6 = vld [vmem:[#allocation6 + $0xd4] ss:$8 sps:$4 sm:$0xff]   ;;  %v1181_v7 = vld [vmem:[#allocation6 + $0xd0] ss:$8 sps:$4 sm:$0xff]   ;;  %v1186_v8 = vld [vmem:[#allocation6 + $0xc4] ss:$8 sps:$4 sm:$0xff]  }
  0x49   :  { %209 = vmatpush1.bf16.msra.mxu0 %v1098_v21  ;;  %v1184_v9 = vld [vmem:[#allocation6 + $0xc0] ss:$8 sps:$4 sm:$0xff]   ;;  %v1189_v10 = vld [vmem:[#allocation6 + $0xb4] ss:$8 sps:$4 sm:$0xff]   ;;  %v1187_v11 = vld [vmem:[#allocation6 + $0xb0] ss:$8 sps:$4 sm:$0xff]  }
  0x4a   :  { %210 = vmatprep.subr.bf16.mxu0 %v1099_v22  ;;  %460 = vmatpush1.bf16.msra.mxu1 %v1120_v29  ;;  %v106_v13 = vshrl.u32 %v105_v12, 7  ;;  %v103_v16 = vld [vmem:[%s1402_s2] sm:$0x3] }
  0x4b   :  { %461 = vmatprep.subr.bf16.mxu1 %v1121_v30 }
  0x4c   :  { %v1375_v14 = vsub.s32 1, %v106_v13  ;;  %v1377_v15 = vsub.s32 0, %v106_v13 }
  0x4d   :  { %211 = vmatpush1.bf16.msra.mxu0 %v1101_v25 }
  0x4e   :  { %462 = vmatpush1.bf16.msra.mxu1 %v1123_v31  ;;  %702 = vmatprep.subr.bf16.mxu0 %v1153_v51  ;;  %v112_v18 = vrot.slane %v103_v16, %v1375_v14  ;;  %v108_v19 = vrot.slane %v103_v16, %v1377_v15 }
  0x4f   :  { %463 = vmatprep.subr.bf16.mxu1 %v1124_v32 }
  0x50   :  { %960 = vmatmul.mubr.msk.bf16.vlgmr.msra.gmra.mxu0 %vm185_vm1, %v1102_v27 }
  0x51   :  { %703 = vmatpush1.bf16.msra.mxu0 %v1151_v50 }
  0x52   :  { %464 = vmatpush1.bf16.msra.mxu1 %v1126_v33  ;;  %704 = vmatprep.subr.bf16.mxu0 %v1156_v52  ;;  %v1192_v33 = vld [vmem:[#allocation6 + $0xa4] ss:$8 sps:$4 sm:$0xff]  }
  0x53   :  { %465 = vmatprep.subr.bf16.mxu1 %v1127_v34  ;;  %v1190_v34 = vld [vmem:[#allocation6 + $0xa0] ss:$8 sps:$4 sm:$0xff]  }
  0x55   :  { %705 = vmatpush1.bf16.msra.mxu0 %v1154_v53 }
  0x56   :  { %466 = vmatpush2.bf16.msra.mxu1 %v1129_v35  ;;  %706 = vmatprep.subr.bf16.mxu0 %v1159_v54  ;;  %v1195_v35 = vld [vmem:[#allocation6 + $0x94] ss:$8 sps:$4 sm:$0xff]  }
  0x57   :  { %467 = vmatprep.subr.bf16.mxu1 %v1130_v36  ;;  %v1193_v36 = vld [vmem:[#allocation6 + $0x90] ss:$8 sps:$4 sm:$0xff]  }
  0x59   :  { %707 = vmatpush1.bf16.msra.mxu0 %v1157_v55 }
  0x5a   :  { %468 = vmatpush2.bf16.msra.mxu1 %v1132_v37  ;;  %708 = vmatprep.subr.bf16.mxu0 %v1162_v56  ;;  %v1198_v37 = vld [vmem:[#allocation6 + $0x84] ss:$8 sps:$4 sm:$0xff]  }
  0x5b   :  { %469 = vmatprep.subr.bf16.mxu1 %v1133_v38  ;;  %v1196_v38 = vld [vmem:[#allocation6 + $0x80] ss:$8 sps:$4 sm:$0xff]  }
  0x5d   :  { %709 = vmatpush1.bf16.msra.mxu0 %v1160_v57 }
  0x5e   :  { %470 = vmatpush2.bf16.msra.mxu1 %v1135_v39  ;;  %710 = vmatprep.subr.bf16.mxu0 %v1165_v58  ;;  %v1199_v39 = vld [vmem:[#allocation7 + $0x78] sm:$0xff]  }
  0x5f   :  { %471 = vmatprep.subr.bf16.mxu1 %v1136_v40  ;;  %v1200_v40 = vld [vmem:[#allocation7 + $0x38] sm:$0xff]  }
  0x61   :  { %711 = vmatpush1.bf16.msra.mxu0 %v1163_v59 }
  0x62   :  { %472 = vmatpush2.bf16.msra.mxu1 %v1138_v41  ;;  %712 = vmatprep.subr.bf16.mxu0 %v1168_v60  ;;  %v1201_v41 = vld [vmem:[#allocation7 + $0x70] sm:$0xff]  }
  0x63   :  { %473 = vmatprep.subr.bf16.mxu1 %v1139_v42  ;;  %v1202_v42 = vld [vmem:[#allocation7 + $0x30] sm:$0xff]  }
  0x65   :  { %713 = vmatpush1.bf16.msra.mxu0 %v1166_v61 }
  0x66   :  { %474 = vmatpush2.bf16.msra.mxu1 %v1141_v43  ;;  %714 = vmatprep.subr.bf16.mxu0 %v1171_v62  ;;  %v1203_v43 = vld [vmem:[#allocation7 + $0x68] sm:$0xff]  }
  0x67   :  { %475 = vmatprep.subr.bf16.mxu1 %v1142_v44  ;;  %v1204_v44 = vld [vmem:[#allocation7 + $0x28] sm:$0xff]  }
  0x69   :  { %715 = vmatpush1.bf16.msra.mxu0 %v1169_v63 }
  0x6a   :  { %476 = vmatpush2.bf16.msra.mxu1 %v1144_v45  ;;  %716 = vmatprep.subr.bf16.mxu0 %v1174_v0  ;;  %v1205_v45 = vld [vmem:[#allocation7 + $0x60] sm:$0xff]  }
  0x6b   :  { %477 = vmatprep.subr.bf16.mxu1 %v1145_v46  ;;  %v1206_v46 = vld [vmem:[#allocation7 + $0x20] sm:$0xff]  }
  0x6d   :  { %717 = vmatpush1.bf16.msra.mxu0 %v1172_v1 }
  0x6e   :  { %478 = vmatpush2.bf16.msra.mxu1 %v1147_v47  ;;  %718 = vmatprep.subr.bf16.mxu0 %v1177_v2  ;;  %v1207_v47 = vld [vmem:[#allocation7 + $0x58] sm:$0xff]   ;;  %v1209_v2 = vld [vmem:[#allocation7 + $0x50] sm:$0xff]  }
  0x6f   :  { %479 = vmatprep.subr.bf16.mxu1 %v1148_v48  ;;  %v1208_v48 = vld [vmem:[#allocation7 + $0x18] sm:$0xff]  }
  0x71   :  { %719 = vmatpush2.bf16.msra.mxu0 %v1175_v3  ;;  %v1210_v3 = vld [vmem:[#allocation7 + $0x10] sm:$0xff]  }
  0x72   :  { %480 = vmatpush2.bf16.msra.mxu1 %v1150_v49  ;;  %720 = vmatprep.subr.bf16.mxu0 %v1180_v4  ;;  %v277_v49 = vld [vmem:[%s1404_s4] sm:$0x3]  ;;  %v1211_v4 = vld [vmem:[#allocation7 + $0x48] sm:$0xff]  }
  0x73   :  { %1051 = vmatprep.subr.bf16.mxu1 %v1199_v39  ;;  %v286_v51 = vrot.slane %v277_v49, %v1375_v14  ;;  %v282_v52 = vrot.slane %v277_v49, %v1377_v15 }
  0x75   :  { %721 = vmatpush2.bf16.msra.mxu0 %v1178_v5  ;;  %v1212_v5 = vld [vmem:[#allocation7 + $0x8] sm:$0xff]  }
  0x76   :  { %722 = vmatprep.subr.bf16.mxu0 %v1183_v6  ;;  %v1213_v6 = vld [vmem:[#allocation7 + $0x40] sm:$0xff]  }
  0x79   :  { %723 = vmatpush2.bf16.msra.mxu0 %v1181_v7  ;;  %v1214_v7 = vld [vmem:[#allocation7] sm:$0xff]  }
  0x7a   :  { %724 = vmatprep.subr.bf16.mxu0 %v1186_v8  ;;  %v530_v8 = vld [vmem:[%s1406_s6] sm:$0x3] }
  0x7d   :  { %725 = vmatpush2.bf16.msra.mxu0 %v1184_v9 }
  0x7e   :  { %726 = vmatprep.subr.bf16.mxu0 %v1189_v10  ;;  %v539_v10 = vrot.slane %v530_v8, %v1375_v14 }
  0x81   :  { %727 = vmatpush2.bf16.msra.mxu0 %v1187_v11  ;;  %v535_v11 = vrot.slane %v530_v8, %v1377_v15  ;;  %v1025_v15 = vld [vmem:[%s1408_s8] ss:$0 sm:$0xff] }
  0x82   :  { %728 = vmatprep.subr.bf16.mxu0 %v1192_v33 }
  0x85   :  { %729 = vmatpush2.bf16.msra.mxu0 %v1190_v34 }
  0x86   :  { %730 = vmatprep.subr.bf16.mxu0 %v1195_v35 }
  0x89   :  { %731 = vmatpush2.bf16.msra.mxu0 %v1193_v36 }
  0x8a   :  { %732 = vmatprep.subr.bf16.mxu0 %v1198_v37 }
  0x8d   :  { %733 = vmatpush2.bf16.msra.mxu0 %v1196_v38 }
 0x110   :  { %v230_v17 = vpop.f32.mrf.mxu0 }
 0x111   :  { %v231_v24 = vadd.f32 %v230_v17, %v108_v19 }
 0x112   :  { %v232_v20 = vpop.f32.mrf.mxu0 }
 0x113   :  { %v233_v22 = vadd.f32 %v232_v20, %v112_v18  ;;  %v239_v30 = vmax.f32 %v231_v24, 0.0 }
 0x114   :  { %v234_v21 = vpop.f32.mrf.mxu0 }
 0x115   :  { %v235_v23 = vadd.f32 %v234_v21, %v108_v19  ;;  %v240_v28 = vmax.f32 %v233_v22, 0.0 }
 0x116   :  { %v236_v25 = vpop.f32.mrf.mxu0 }
 0x117   :  { %v237_v26 = vadd.f32 %v236_v25, %v112_v18  ;;  %v241_v27 = vmax.f32 %v235_v23, 0.0 }
 0x119   :  { %v242_v29 = vmax.f32 %v237_v26, 0.0  ;;  %v243_v32 = vpack.c.bf16 %v241_v27, %v239_v30 }
 0x11b   :  { %v244_v31 = vpack.c.bf16 %v242_v29, %v240_v28 }
 0x11d   :  { %481 = vmatprep.mubr.bf16.mxu1 %v244_v31 }
 0x11e   :  { %482 = vmatmul.mubr.bf16.vlgmr.msra.gmra.mxu1 %v243_v32 }
 0x11f   :  { %1052 = vmatpush3.bf16.msra.mxu1 %v1200_v40 }
 0x120   :  { %1053 = vmatprep.subr.bf16.mxu1 %v1201_v41 }
 0x123   :  { %1054 = vmatpush3.bf16.msra.mxu1 %v1202_v42 }
 0x124   :  { %1055 = vmatprep.subr.bf16.mxu1 %v1203_v43 }
 0x127   :  { %1056 = vmatpush3.bf16.msra.mxu1 %v1204_v44 }
 0x128   :  { %1057 = vmatprep.subr.bf16.mxu1 %v1205_v45 }
 0x12b   :  { %1058 = vmatpush3.bf16.msra.mxu1 %v1206_v46 }
 0x12c   :  { %1059 = vmatprep.subr.bf16.mxu1 %v1207_v47 }
 0x12f   :  { %1060 = vmatpush3.bf16.msra.mxu1 %v1208_v48 }
 0x130   :  { %1061 = vmatprep.subr.bf16.mxu1 %v1209_v2 }
 0x133   :  { %1062 = vmatpush3.bf16.msra.mxu1 %v1210_v3 }
 0x134   :  { %1063 = vmatprep.subr.bf16.mxu1 %v1211_v4 }
 0x137   :  { %1064 = vmatpush3.bf16.msra.mxu1 %v1212_v5 }
 0x138   :  { %1065 = vmatprep.subr.bf16.mxu1 %v1213_v6 }
 0x13b   :  { %1066 = vmatpush3.bf16.msra.mxu1 %v1214_v7 }
 0x1de   :  { %v483_v50 = vpop.f32.mrf.mxu1 }
 0x1df   :  { %v484_v57 = vadd.f32 %v483_v50, %v282_v52 }
 0x1e0   :  { %v485_v53 = vpop.f32.mrf.mxu1 }
 0x1e1   :  { %v486_v55 = vadd.f32 %v485_v53, %v286_v51  ;;  %v492_v63 = vmax.f32 %v484_v57, 0.0 }
 0x1e2   :  { %v487_v54 = vpop.f32.mrf.mxu1 }
 0x1e3   :  { %v488_v56 = vadd.f32 %v487_v54, %v282_v52  ;;  %v493_v61 = vmax.f32 %v486_v55, 0.0 }
 0x1e4   :  { %v489_v58 = vpop.f32.mrf.mxu1 }
 0x1e5   :  { %v490_v59 = vadd.f32 %v489_v58, %v286_v51  ;;  %v494_v60 = vmax.f32 %v488_v56, 0.0 }
 0x1e7   :  { %v495_v62 = vmax.f32 %v490_v59, 0.0  ;;  %v496_v1 = vpack.c.bf16 %v494_v60, %v492_v63 }
 0x1e9   :  { %v497_v0 = vpack.c.bf16 %v495_v62, %v493_v61 }
 0x1eb   :  { %734 = vmatprep.mubr.bf16.mxu0 %v497_v0 }
 0x1ec   :  { %735 = vmatmul.mubr.bf16.vlgmr.msra.gmra.mxu0 %v496_v1 }
 0x2ac   :  { %v736_v9 = vpop.f32.mrf.mxu0 }
 0x2ad   :  { %v737_v18 = vadd.f32 %v736_v9, %v535_v11 }
 0x2ae   :  { %v738_v12 = vpop.f32.mrf.mxu0 }
 0x2af   :  { %v739_v16 = vadd.f32 %v738_v12, %v539_v10  ;;  %v745_v24 = vmax.f32 %v737_v18, 0.0 }
 0x2b0   :  { %v740_v13 = vpop.f32.mrf.mxu0 }
 0x2b1   :  { %v741_v17 = vadd.f32 %v740_v13, %v535_v11  ;;  %v746_v22 = vmax.f32 %v739_v16, 0.0 }
 0x2b2   :  { %v742_v19 = vpop.f32.mrf.mxu0 }
 0x2b3   :  { %v743_v20 = vadd.f32 %v742_v19, %v539_v10  ;;  %v747_v21 = vmax.f32 %v741_v17, 0.0 }
 0x2b5   :  { %v748_v23 = vmax.f32 %v743_v20, 0.0  ;;  %v749_v26 = vpack.c.bf16 %v747_v21, %v745_v24 }
 0x2b7   :  { %v750_v25 = vpack.c.bf16 %v748_v23, %v746_v22 }
 0x2b9   :  { %918 = vmatprep.mubr.bf16.mxu1 %v750_v25 }
 0x2ba   :  { %919 = vmatmul.mubr.bf16.vlgmr.msra.gmra.mxu1 %v749_v26 }
 0x37a   :  { %v1067_v27 = vpop.f32.mrf.mxu1 }
 0x37c   :  { %v1068_v28 = vpop.f32.mrf.mxu1 }
 0x37d   :  { %v1069_v29 = vadd.f32 %v1068_v28, %v1067_v27 }
 0x37e   :  { %v1070_v14 = vpop.f32.mrf.mxu1 }
 0x37f   :  { %v921_v32 = vadd.f32 %v1069_v29, %v1025_v15 }
 0x380   :  { %v1071_v30 = vpop.f32.mrf.mxu1 }
 0x381   :  { %v1072_v31 = vadd.f32 %v1071_v30, %v1070_v14 }
 0x383   :  { %v924_v33 = vadd.f32 %v1072_v31, %v1025_v15 }
 0x385   :  { %v1049_v34 = vpack.c.bf16 %v924_v33, %v921_v32 }
 0x387   :  { %1050 = vst [vmem:[%s1409_s9] sm:$0xff] %v1049_v34  }
 0x388   :  { %941 = vsyncpa [#allocation3], 1 }
 0x389   :  { %942 = vsyncpa [#allocation5], 1 }
 0x38a   :  { %943 = vsyncpa [#allocation8], 1 }

</bundles_post_ra>
